<compile_context>
chip_gen: v7x
topology: tpu7x:2x2x1
jax: 0.10.0
libtpu: 0.0.40
codegen_flags: <defaults>
</compile_context>

<pallas_src>
import functools

import jax
import jax.numpy as jnp
from jax import lax
from jax.experimental import pallas as pl
from jax.experimental.pallas import tpu as pltpu


# ----------------------------- small helpers ------------------------------- #

def _layernorm_f32(x, gamma, beta, eps=1e-5):
    """LayerNorm over the last dim; stats and affine in f32, returns f32."""
    xf = x.astype(jnp.float32)
    mean = jnp.mean(xf, axis=-1, keepdims=True)
    xc = xf - mean
    var = jnp.mean(xc * xc, axis=-1, keepdims=True)
    return xc * lax.rsqrt(var + eps) * gamma + beta


def _const_spec(shape):
    """Full-array BlockSpec with a constant index_map -> weight stays resident."""
    return pl.BlockSpec(shape, lambda *_: (0,) * len(shape))


def _pick_batch_tile(B, L, target_rows=256):
    """Batch tile so Bt*L ~ target MXU rows, with >= 2 grid steps when B > 1."""
    bt = max(1, min(B, pl.cdiv(target_rows, L)))
    if B > 1:
        bt = min(bt, max(1, (B + 1) // 2))   # keep both TensorCores busy (v7x)
    return bt


def _layer_vmem_budget(rows, D, F, wbytes=2, abytes=2):
    """Rough per-layer VMEM budget (bytes): resident weights (x2 in case the
    constant-index blocks are double-buffered) + double-buffered in/out tiles
    + f32 intermediates.  Capped at 64 MiB (v7x physical)."""
    weights = (D * 3 * D + 3 * D + D * D + D + D * F + F + F * D + D) * wbytes
    ln = 4 * D * 4
    io = 2 * 2 * rows * D * abytes
    inter = rows * (3 * D + F + 4 * D) * 4
    budget = int(1.5 * (2 * weights + ln + io + inter)) + (2 << 20)
    return min(budget, 64 * 1024 * 1024)


# --------------------- fused transformer layer kernel ---------------------- #

def layer_kernel(x_ref, ln1g_ref, ln1b_ref, wqkv_ref, bqkv_ref, wo_ref, bo_ref,
                 ln2g_ref, ln2b_ref, w1_ref, b1_ref, w2_ref, b2_ref,
                 o_ref, attn_ref, *, heads, bt, L):
    x = x_ref[...]                                # [Bt*L, D] model dtype (bf16)
    D = x.shape[-1]
    Dh = D // heads

    # ---- attention branch --------------------------------------------------
    h = _layernorm_f32(x, ln1g_ref[...], ln1b_ref[...]).astype(x.dtype)
    qkv = jnp.dot(h, wqkv_ref[...], preferred_element_type=jnp.float32)
    qkv = (qkv + bqkv_ref[...]).astype(x.dtype)   # [Bt*L, 3D]; scale folded in Q

    # causal mask built in-kernel (no [L, L] mask DMA)
    row = lax.broadcasted_iota(jnp.int32, (L, L), 0)
    col = lax.broadcasted_iota(jnp.int32, (L, L), 1)
    causal = col <= row

    dn = (((1,), (1,)), ((), ()))                 # q @ k^T (contract last dims)
    for b in range(bt):                           # static loops, static slices
        r0 = b * L
        for hh in range(heads):
            qh = qkv[r0:r0 + L, hh * Dh:(hh + 1) * Dh]
            kh = qkv[r0:r0 + L, D + hh * Dh:D + (hh + 1) * Dh]
            vh = qkv[r0:r0 + L, 2 * D + hh * Dh:2 * D + (hh + 1) * Dh]
            s = lax.dot_general(qh, kh, dn, preferred_element_type=jnp.float32)
            s = jnp.where(causal, s, -1e30)       # finite negative (NaN-safe)
            s = s - jnp.max(s, axis=-1, keepdims=True)
            p = jnp.exp(s)
            p = p * pl.reciprocal(jnp.sum(p, axis=-1, keepdims=True), approx=True)
            # write the head straight into the [Bt*L, D] scratch (no concatenate)
            attn_ref[r0:r0 + L, hh * Dh:(hh + 1) * Dh] = jnp.dot(
                p.astype(x.dtype), vh, preferred_element_type=jnp.float32)

    y = jnp.dot(attn_ref[...].astype(x.dtype), wo_ref[...],
                preferred_element_type=jnp.float32) + bo_ref[...]
    x1 = x.astype(jnp.float32) + y                # residual 1 (f32)

    # ---- MLP branch ----------------------------------------------------------
    h2 = _layernorm_f32(x1, ln2g_ref[...], ln2b_ref[...]).astype(x.dtype)
    u = jnp.dot(h2, w1_ref[...], preferred_element_type=jnp.float32) + b1_ref[...]
    u = u * jax.nn.sigmoid(1.702 * u)             # QuickGELU (f32, EUP sigmoid)
    # TODO(synk): if VMEM-tight at real CLIP sizes on v7x, chunk the F dimension
    # here (accumulate into a [rows, D] f32 scratch) instead of shrinking rows.
    y2 = jnp.dot(u.astype(x.dtype), w2_ref[...],
                 preferred_element_type=jnp.float32) + b2_ref[...]
    o_ref[...] = (x1 + y2).astype(o_ref.dtype)


def transformer_layer(x2d, blk, *, heads, bt, L):
    R, D = x2d.shape
    F = blk['fc_w'].shape[1]
    rows = bt * L
    assert R % rows == 0
    return pl.pallas_call(
        functools.partial(layer_kernel, heads=heads, bt=bt, L=L),
        out_shape=jax.ShapeDtypeStruct((R, D), x2d.dtype),
        grid=(R // rows,),
        in_specs=[
            pl.BlockSpec((rows, D), lambda i: (i, 0)),           # activations
            _const_spec((1, D)), _const_spec((1, D)),            # ln1 gamma/beta
            _const_spec((D, 3 * D)), _const_spec((1, 3 * D)),    # in_proj (scaled Q)
            _const_spec((D, D)), _const_spec((1, D)),            # out_proj
            _const_spec((1, D)), _const_spec((1, D)),            # ln2 gamma/beta
            _const_spec((D, F)), _const_spec((1, F)),            # fc
            _const_spec((F, D)), _const_spec((1, D)),            # proj
        ],
        out_specs=pl.BlockSpec((rows, D), lambda i: (i, 0)),
        scratch_shapes=[pltpu.VMEM((rows, D), jnp.float32)],     # per-head attn out
        compiler_params=pltpu.CompilerParams(
            dimension_semantics=("parallel",),
            vmem_limit_bytes=_layer_vmem_budget(rows, D, F)),
    )(x2d,
      blk['ln1_g'], blk['ln1_b'],
      blk['in_proj_w'], blk['in_proj_b'],
      blk['out_proj_w'], blk['out_proj_b'],
      blk['ln2_g'], blk['ln2_b'],
      blk['fc_w'], blk['fc_b'],
      blk['proj_w'], blk['proj_b'])


# -------------------- final LN + text projection (pooled) ------------------- #

def pooled_head_kernel(x_ref, g_ref, b_ref, wp_ref, o_ref):
    h = _layernorm_f32(x_ref[...], g_ref[...], b_ref[...]).astype(x_ref.dtype)
    o_ref[...] = jnp.dot(h, wp_ref[...],
                         preferred_element_type=jnp.float32).astype(o_ref.dtype)


def pooled_projection(pooled, gamma, beta, wproj):
    B = pooled.shape[0]
    E = wproj.shape[1]
    vspec = pl.BlockSpec(memory_space=pltpu.MemorySpace.VMEM)
    return pl.pallas_call(
        pooled_head_kernel,
        out_shape=jax.ShapeDtypeStruct((B, E), pooled.dtype),
        in_specs=[vspec, vspec, vspec, vspec],
        out_specs=vspec,
    )(pooled, gamma, beta, wproj)


# --------------------------- model (JAX glue) ------------------------------- #

def text_encoder_forward(params, text, heads):
    B, L = text.shape
    D = params['token_embedding'].shape[1]

    # token_embedding(text).type(dtype) + positional_embedding
    # TODO(synk): data-dependent token-embedding gather stays in plain JAX glue.
    x = jnp.take(params['token_embedding'], text, axis=0)            # [B, L, D]
    x = x + params['positional_embedding'][None, :, :]

    # batch tiling: Bt*L rows per grid step; pad batch (zero rows are numerically
    # safe through LN/softmax/GELU and are discarded at pooling).
    bt = _pick_batch_tile(B, L)
    Bp = pl.cdiv(B, bt) * bt
    if Bp != B:
        x = jnp.pad(x, ((0, Bp - B), (0, 0), (0, 0)))

    # permute(1,0,2) -> transformer -> permute(1,0,2) is layout-only; absorbed.
    x2d = x.reshape(Bp * L, D)
    for blk in params['blocks']:
        x2d = transformer_layer(x2d, blk, heads=heads, bt=bt, L=L)
    x = x2d.reshape(Bp, L, D)

    # ln_final is per-position, so gathering EOT rows first is numerically
    # identical to ln_final(x)[arange(B), eot] and avoids LN/proj on B*L rows.
    eot = jnp.argmax(text, axis=-1)
    pooled = x[jnp.arange(B), eot]                                    # [B, D]
    return pooled_projection(pooled, params['ln_final_g'], params['ln_final_b'],
                             params['text_projection'])


# ----------------------------- parameter init ------------------------------- #

def init_params(key, vocab, L, D, heads, layers, E):
    keys = iter(jax.random.split(key, 8 + 10 * layers))

    def nrm(shape, scale=0.02):
        return (scale * jax.random.normal(next(keys), shape)).astype(jnp.float32)

    blocks = []
    for _ in range(layers):
        blocks.append(dict(
            ln1_g=jnp.ones((D,), jnp.float32), ln1_b=jnp.zeros((D,), jnp.float32),
            in_proj_w=nrm((D, 3 * D)), in_proj_b=nrm((3 * D,)),
            out_proj_w=nrm((D, D)),    out_proj_b=nrm((D,)),
            ln2_g=jnp.ones((D,), jnp.float32), ln2_b=jnp.zeros((D,), jnp.float32),
            fc_w=nrm((D, 4 * D)),   fc_b=nrm((4 * D,)),
            proj_w=nrm((4 * D, D)), proj_b=nrm((D,)),
        ))

    return dict(
        token_embedding=nrm((vocab, D)),
        positional_embedding=nrm((L, D), scale=0.01),
        blocks=blocks,
        ln_final_g=jnp.ones((D,), jnp.float32),
        ln_final_b=jnp.zeros((D,), jnp.float32),
        text_projection=nrm((D, E)),
    )


def prepare_params(params, heads, dtype=jnp.bfloat16):
    """One-time host prep: cast to bf16, reshape biases, fold attn scale into Q."""
    D = params['token_embedding'].shape[1]
    scale = (D // heads) ** -0.5
    blocks = []
    for blk in params['blocks']:
        wqkv = blk['in_proj_w'].astype(jnp.float32)
        bqkv = blk['in_proj_b'].astype(jnp.float32)
        wqkv = wqkv.at[:, :D].multiply(scale)     # fold scale into Q projection
        bqkv = bqkv.at[:D].multiply(scale)
        blocks.append(dict(
            ln1_g=blk['ln1_g'].astype(jnp.float32).reshape(1, -1),
            ln1_b=blk['ln1_b'].astype(jnp.float32).reshape(1, -1),
            in_proj_w=wqkv.astype(dtype),
            in_proj_b=bqkv.reshape(1, -1).astype(dtype),
            out_proj_w=blk['out_proj_w'].astype(dtype),
            out_proj_b=blk['out_proj_b'].reshape(1, -1).astype(dtype),
            ln2_g=blk['ln2_g'].astype(jnp.float32).reshape(1, -1),
            ln2_b=blk['ln2_b'].astype(jnp.float32).reshape(1, -1),
            fc_w=blk['fc_w'].astype(dtype),
            fc_b=blk['fc_b'].reshape(1, -1).astype(dtype),
            proj_w=blk['proj_w'].astype(dtype),
            proj_b=blk['proj_b'].reshape(1, -1).astype(dtype),
        ))
    return dict(
        token_embedding=params['token_embedding'].astype(dtype),
        positional_embedding=params['positional_embedding'].astype(dtype),
        blocks=blocks,
        ln_final_g=params['ln_final_g'].astype(jnp.float32).reshape(1, -1),
        ln_final_b=params['ln_final_b'].astype(jnp.float32).reshape(1, -1),
        text_projection=params['text_projection'].astype(dtype),
    )


# ---------------------------------- main ------------------------------------ #

if __name__ == "__main__":
    B, L, D, HEADS, LAYERS, VOCAB, E = 2, 8, 32, 4, 2, 64, 16

    key = jax.random.PRNGKey(0)
    pkey, tkey = jax.random.split(key)
    raw_params = init_params(pkey, VOCAB, L, D, HEADS, LAYERS, E)
    params = prepare_params(raw_params, HEADS, dtype=jnp.bfloat16)   # cast once

    # tokens in [1, vocab-2], EOT token (= vocab-1, the max id) placed per row
    text = jax.random.randint(tkey, (B, L), 1, VOCAB - 1, dtype=jnp.int32)
    eot_pos = jnp.array([L - 1, L // 2], dtype=jnp.int32)
    text = text.at[jnp.arange(B), eot_pos].set(VOCAB - 1)

    out = text_encoder_forward(params, text, HEADS)
    out = jax.block_until_ready(out)
    assert out.shape == (B, E) and out.dtype == jnp.bfloat16
    assert bool(jnp.all(jnp.isfinite(out.astype(jnp.float32))))
    print("KERNEL_OK")
</pallas_src>

<mosaic_0001>
module attributes {stable_mosaic.version = 11 : i64} {
  func.func @layer_kernel(%arg0: i32, %arg1: memref<8x32xbf16, #tpu.memory_space<vmem>>, %arg2: memref<1x32xf32, #tpu.memory_space<vmem>>, %arg3: memref<1x32xf32, #tpu.memory_space<vmem>>, %arg4: memref<32x96xbf16, #tpu.memory_space<vmem>>, %arg5: memref<1x96xbf16, #tpu.memory_space<vmem>>, %arg6: memref<32x32xbf16, #tpu.memory_space<vmem>>, %arg7: memref<1x32xbf16, #tpu.memory_space<vmem>>, %arg8: memref<1x32xf32, #tpu.memory_space<vmem>>, %arg9: memref<1x32xf32, #tpu.memory_space<vmem>>, %arg10: memref<32x128xbf16, #tpu.memory_space<vmem>>, %arg11: memref<1x128xbf16, #tpu.memory_space<vmem>>, %arg12: memref<128x32xbf16, #tpu.memory_space<vmem>>, %arg13: memref<1x32xbf16, #tpu.memory_space<vmem>>, %arg14: memref<8x32xbf16, #tpu.memory_space<vmem>>, %arg15: memref<8x32xf32, #tpu.memory_space<vmem>>) attributes {dimension_semantics = [#tpu.dimension_semantics<parallel>], iteration_bounds = array<i64: 2>, scalar_prefetch = 0 : i64, scratch_operands = 1 : i64, tpu.core_type = #tpu.core_type<tc>, window_params = [{transform_indices = @transform_0, window_bounds = array<i64: 8, 32>}, {pipeline_mode = #tpu.pipeline_mode<synchronous>, transform_indices = @transform_1, window_bounds = array<i64: 1, 32>}, {pipeline_mode = #tpu.pipeline_mode<synchronous>, transform_indices = @transform_2, window_bounds = array<i64: 1, 32>}, {pipeline_mode = #tpu.pipeline_mode<synchronous>, transform_indices = @transform_3, window_bounds = array<i64: 32, 96>}, {pipeline_mode = #tpu.pipeline_mode<synchronous>, transform_indices = @transform_4, window_bounds = array<i64: 1, 96>}, {pipeline_mode = #tpu.pipeline_mode<synchronous>, transform_indices = @transform_5, window_bounds = array<i64: 32, 32>}, {pipeline_mode = #tpu.pipeline_mode<synchronous>, transform_indices = @transform_6, window_bounds = array<i64: 1, 32>}, {pipeline_mode = #tpu.pipeline_mode<synchronous>, transform_indices = @transform_7, window_bounds = array<i64: 1, 32>}, {pipeline_mode = #tpu.pipeline_mode<synchronous>, transform_indices = @transform_8, window_bounds = array<i64: 1, 32>}, {pipeline_mode = #tpu.pipeline_mode<synchronous>, transform_indices = @transform_9, window_bounds = array<i64: 32, 128>}, {pipeline_mode = #tpu.pipeline_mode<synchronous>, transform_indices = @transform_10, window_bounds = array<i64: 1, 128>}, {pipeline_mode = #tpu.pipeline_mode<synchronous>, transform_indices = @transform_11, window_bounds = array<i64: 128, 32>}, {pipeline_mode = #tpu.pipeline_mode<synchronous>, transform_indices = @transform_12, window_bounds = array<i64: 1, 32>}, {transform_indices = @transform_13, window_bounds = array<i64: 8, 32>}]} {
    %c0 = arith.constant 0 : index
    %c0_0 = arith.constant 0 : index
    %0 = vector.load %arg1[%c0, %c0_0] : memref<8x32xbf16, #tpu.memory_space<vmem>>, vector<8x32xbf16>
    %c0_1 = arith.constant 0 : index
    %c0_2 = arith.constant 0 : index
    %1 = vector.load %arg2[%c0_1, %c0_2] : memref<1x32xf32, #tpu.memory_space<vmem>>, vector<1x32xf32>
    %c0_3 = arith.constant 0 : index
    %c0_4 = arith.constant 0 : index
    %2 = vector.load %arg3[%c0_3, %c0_4] : memref<1x32xf32, #tpu.memory_space<vmem>>, vector<1x32xf32>
    %3 = arith.extf %0 : vector<8x32xbf16> to vector<8x32xf32>
    %cst = arith.constant dense<0.000000e+00> : vector<8xf32>
    %4 = vector.multi_reduction <add>, %3, %cst [1] : vector<8x32xf32> to vector<8xf32>
    %5 = vector.shape_cast %4 : vector<8xf32> to vector<8x1xf32>
    %cst_5 = arith.constant 3.200000e+01 : f32
    %6 = vector.broadcast %cst_5 : f32 to vector<8x1xf32>
    %7 = arith.divf %5, %6 : vector<8x1xf32>
    %8 = vector.broadcast %7 : vector<8x1xf32> to vector<8x32xf32>
    %9 = arith.subf %3, %8 : vector<8x32xf32>
    %10 = arith.mulf %9, %9 : vector<8x32xf32>
    %cst_6 = arith.constant dense<0.000000e+00> : vector<8xf32>
    %11 = vector.multi_reduction <add>, %10, %cst_6 [1] : vector<8x32xf32> to vector<8xf32>
    %12 = vector.shape_cast %11 : vector<8xf32> to vector<8x1xf32>
    %cst_7 = arith.constant 3.200000e+01 : f32
    %13 = vector.broadcast %cst_7 : f32 to vector<8x1xf32>
    %14 = arith.divf %12, %13 : vector<8x1xf32>
    %cst_8 = arith.constant 9.99999974E-6 : f32
    %15 = vector.broadcast %cst_8 : f32 to vector<8x1xf32>
    %16 = arith.addf %14, %15 : vector<8x1xf32>
    %17 = math.rsqrt %16 : vector<8x1xf32>
    %18 = vector.broadcast %17 : vector<8x1xf32> to vector<8x32xf32>
    %19 = arith.mulf %9, %18 : vector<8x32xf32>
    %20 = vector.broadcast %1 : vector<1x32xf32> to vector<8x32xf32>
    %21 = arith.mulf %19, %20 : vector<8x32xf32>
    %22 = vector.broadcast %2 : vector<1x32xf32> to vector<8x32xf32>
    %23 = arith.addf %21, %22 : vector<8x32xf32>
    %24 = arith.truncf %23 : vector<8x32xf32> to vector<8x32xbf16>
    %c0_9 = arith.constant 0 : index
    %c0_10 = arith.constant 0 : index
    %25 = vector.load %arg4[%c0_9, %c0_10] : memref<32x96xbf16, #tpu.memory_space<vmem>>, vector<32x96xbf16>
    %cst_11 = arith.constant dense<0.000000e+00> : vector<8x96xf32>
    %26 = tpu.matmul %24, %25, %cst_11 {dimension_numbers = #tpu.dot_dimension_numbers<[1], [0], [0], [1], [0, 0, 1, 1], [], []>} : vector<8x32xbf16>, vector<32x96xbf16>, vector<8x96xf32> -> vector<8x96xf32>
    %c0_12 = arith.constant 0 : index
    %c0_13 = arith.constant 0 : index
    %27 = vector.load %arg5[%c0_12, %c0_13] : memref<1x96xbf16, #tpu.memory_space<vmem>>, vector<1x96xbf16>
    %28 = arith.extf %27 : vector<1x96xbf16> to vector<1x96xf32>
    %29 = vector.broadcast %28 : vector<1x96xf32> to vector<8x96xf32>
    %30 = arith.addf %26, %29 : vector<8x96xf32>
    %31 = arith.truncf %30 : vector<8x96xf32> to vector<8x96xbf16>
    %32 = tpu.iota {dimensions = array<i32: 0>} : vector<8x8xi32>
    %33 = tpu.iota {dimensions = array<i32: 1>} : vector<8x8xi32>
    %34 = arith.cmpi sle, %33, %32 : vector<8x8xi32>
    %35 = vector.extract_strided_slice %31 {offsets = [0, 0], sizes = [8, 8], strides = [1, 1]} : vector<8x96xbf16> to vector<8x8xbf16>
    %36 = vector.extract_strided_slice %31 {offsets = [0, 32], sizes = [8, 8], strides = [1, 1]} : vector<8x96xbf16> to vector<8x8xbf16>
    %37 = vector.extract_strided_slice %31 {offsets = [0, 64], sizes = [8, 8], strides = [1, 1]} : vector<8x96xbf16> to vector<8x8xbf16>
    %cst_14 = arith.constant dense<0.000000e+00> : vector<8x8xf32>
    %38 = tpu.matmul %35, %36, %cst_14 {dimension_numbers = #tpu.dot_dimension_numbers<[1], [1], [0], [0], [0, 0, 1, 0], [], []>} : vector<8x8xbf16>, vector<8x8xbf16>, vector<8x8xf32> -> vector<8x8xf32>
    %cst_15 = arith.constant -1.000000e+30 : f32
    %39 = vector.broadcast %cst_15 : f32 to vector<8x8xf32>
    %40 = arith.select %34, %38, %39 : vector<8x8xi1>, vector<8x8xf32>
    %cst_16 = arith.constant dense<0xFF800000> : vector<8xf32>
    %41 = vector.multi_reduction <maximumf>, %40, %cst_16 [1] : vector<8x8xf32> to vector<8xf32>
    %42 = vector.shape_cast %41 : vector<8xf32> to vector<8x1xf32>
    %43 = vector.broadcast %42 : vector<8x1xf32> to vector<8x8xf32>
    %44 = arith.subf %40, %43 : vector<8x8xf32>
    %45 = math.exp %44 : vector<8x8xf32>
    %cst_17 = arith.constant dense<0.000000e+00> : vector<8xf32>
    %46 = vector.multi_reduction <add>, %45, %cst_17 [1] : vector<8x8xf32> to vector<8xf32>
    %47 = vector.shape_cast %46 : vector<8xf32> to vector<8x1xf32>
    %48 = tpu.reciprocal %47 {approx = true} : vector<8x1xf32> -> vector<8x1xf32>
    %49 = vector.broadcast %48 : vector<8x1xf32> to vector<8x8xf32>
    %50 = arith.mulf %45, %49 : vector<8x8xf32>
    %51 = arith.truncf %50 : vector<8x8xf32> to vector<8x8xbf16>
    %cst_18 = arith.constant dense<0.000000e+00> : vector<8x8xf32>
    %52 = tpu.matmul %51, %37, %cst_18 {dimension_numbers = #tpu.dot_dimension_numbers<[1], [0], [0], [1], [0, 0, 1, 1], [], []>} : vector<8x8xbf16>, vector<8x8xbf16>, vector<8x8xf32> -> vector<8x8xf32>
    %c0_19 = arith.constant 0 : index
    %c0_20 = arith.constant 0 : index
    %53 = vector.load %arg15[%c0_19, %c0_20] : memref<8x32xf32, #tpu.memory_space<vmem>>, vector<8x8xf32>
    tpu.vector_store %arg15[%c0_19, %c0_20], %52 {strides = array<i32>} : memref<8x32xf32, #tpu.memory_space<vmem>>, vector<8x8xf32>,
    %54 = vector.extract_strided_slice %31 {offsets = [0, 8], sizes = [8, 8], strides = [1, 1]} : vector<8x96xbf16> to vector<8x8xbf16>
    %55 = vector.extract_strided_slice %31 {offsets = [0, 40], sizes = [8, 8], strides = [1, 1]} : vector<8x96xbf16> to vector<8x8xbf16>
    %56 = vector.extract_strided_slice %31 {offsets = [0, 72], sizes = [8, 8], strides = [1, 1]} : vector<8x96xbf16> to vector<8x8xbf16>
    %cst_21 = arith.constant dense<0.000000e+00> : vector<8x8xf32>
    %57 = tpu.matmul %54, %55, %cst_21 {dimension_numbers = #tpu.dot_dimension_numbers<[1], [1], [0], [0], [0, 0, 1, 0], [], []>} : vector<8x8xbf16>, vector<8x8xbf16>, vector<8x8xf32> -> vector<8x8xf32>
    %cst_22 = arith.constant -1.000000e+30 : f32
    %58 = vector.broadcast %cst_22 : f32 to vector<8x8xf32>
    %59 = arith.select %34, %57, %58 : vector<8x8xi1>, vector<8x8xf32>
    %cst_23 = arith.constant dense<0xFF800000> : vector<8xf32>
    %60 = vector.multi_reduction <maximumf>, %59, %cst_23 [1] : vector<8x8xf32> to vector<8xf32>
    %61 = vector.shape_cast %60 : vector<8xf32> to vector<8x1xf32>
    %62 = vector.broadcast %61 : vector<8x1xf32> to vector<8x8xf32>
    %63 = arith.subf %59, %62 : vector<8x8xf32>
    %64 = math.exp %63 : vector<8x8xf32>
    %cst_24 = arith.constant dense<0.000000e+00> : vector<8xf32>
    %65 = vector.multi_reduction <add>, %64, %cst_24 [1] : vector<8x8xf32> to vector<8xf32>
    %66 = vector.shape_cast %65 : vector<8xf32> to vector<8x1xf32>
    %67 = tpu.reciprocal %66 {approx = true} : vector<8x1xf32> -> vector<8x1xf32>
    %68 = vector.broadcast %67 : vector<8x1xf32> to vector<8x8xf32>
    %69 = arith.mulf %64, %68 : vector<8x8xf32>
    %70 = arith.truncf %69 : vector<8x8xf32> to vector<8x8xbf16>
    %cst_25 = arith.constant dense<0.000000e+00> : vector<8x8xf32>
    %71 = tpu.matmul %70, %56, %cst_25 {dimension_numbers = #tpu.dot_dimension_numbers<[1], [0], [0], [1], [0, 0, 1, 1], [], []>} : vector<8x8xbf16>, vector<8x8xbf16>, vector<8x8xf32> -> vector<8x8xf32>
    %c0_26 = arith.constant 0 : index
    %c8 = arith.constant 8 : index
    %72 = vector.load %arg15[%c0_26, %c8] : memref<8x32xf32, #tpu.memory_space<vmem>>, vector<8x8xf32>
    tpu.vector_store %arg15[%c0_26, %c8], %71 {strides = array<i32>} : memref<8x32xf32, #tpu.memory_space<vmem>>, vector<8x8xf32>,
    %73 = vector.extract_strided_slice %31 {offsets = [0, 16], sizes = [8, 8], strides = [1, 1]} : vector<8x96xbf16> to vector<8x8xbf16>
    %74 = vector.extract_strided_slice %31 {offsets = [0, 48], sizes = [8, 8], strides = [1, 1]} : vector<8x96xbf16> to vector<8x8xbf16>
    %75 = vector.extract_strided_slice %31 {offsets = [0, 80], sizes = [8, 8], strides = [1, 1]} : vector<8x96xbf16> to vector<8x8xbf16>
    %cst_27 = arith.constant dense<0.000000e+00> : vector<8x8xf32>
    %76 = tpu.matmul %73, %74, %cst_27 {dimension_numbers = #tpu.dot_dimension_numbers<[1], [1], [0], [0], [0, 0, 1, 0], [], []>} : vector<8x8xbf16>, vector<8x8xbf16>, vector<8x8xf32> -> vector<8x8xf32>
    %cst_28 = arith.constant -1.000000e+30 : f32
    %77 = vector.broadcast %cst_28 : f32 to vector<8x8xf32>
    %78 = arith.select %34, %76, %77 : vector<8x8xi1>, vector<8x8xf32>
    %cst_29 = arith.constant dense<0xFF800000> : vector<8xf32>
    %79 = vector.multi_reduction <maximumf>, %78, %cst_29 [1] : vector<8x8xf32> to vector<8xf32>
    %80 = vector.shape_cast %79 : vector<8xf32> to vector<8x1xf32>
    %81 = vector.broadcast %80 : vector<8x1xf32> to vector<8x8xf32>
    %82 = arith.subf %78, %81 : vector<8x8xf32>
    %83 = math.exp %82 : vector<8x8xf32>
    %cst_30 = arith.constant dense<0.000000e+00> : vector<8xf32>
    %84 = vector.multi_reduction <add>, %83, %cst_30 [1] : vector<8x8xf32> to vector<8xf32>
    %85 = vector.shape_cast %84 : vector<8xf32> to vector<8x1xf32>
    %86 = tpu.reciprocal %85 {approx = true} : vector<8x1xf32> -> vector<8x1xf32>
    %87 = vector.broadcast %86 : vector<8x1xf32> to vector<8x8xf32>
    %88 = arith.mulf %83, %87 : vector<8x8xf32>
    %89 = arith.truncf %88 : vector<8x8xf32> to vector<8x8xbf16>
    %cst_31 = arith.constant dense<0.000000e+00> : vector<8x8xf32>
    %90 = tpu.matmul %89, %75, %cst_31 {dimension_numbers = #tpu.dot_dimension_numbers<[1], [0], [0], [1], [0, 0, 1, 1], [], []>} : vector<8x8xbf16>, vector<8x8xbf16>, vector<8x8xf32> -> vector<8x8xf32>
    %c0_32 = arith.constant 0 : index
    %c16 = arith.constant 16 : index
    %91 = vector.load %arg15[%c0_32, %c16] : memref<8x32xf32, #tpu.memory_space<vmem>>, vector<8x8xf32>
    tpu.vector_store %arg15[%c0_32, %c16], %90 {strides = array<i32>} : memref<8x32xf32, #tpu.memory_space<vmem>>, vector<8x8xf32>,
    %92 = vector.extract_strided_slice %31 {offsets = [0, 24], sizes = [8, 8], strides = [1, 1]} : vector<8x96xbf16> to vector<8x8xbf16>
    %93 = vector.extract_strided_slice %31 {offsets = [0, 56], sizes = [8, 8], strides = [1, 1]} : vector<8x96xbf16> to vector<8x8xbf16>
    %94 = vector.extract_strided_slice %31 {offsets = [0, 88], sizes = [8, 8], strides = [1, 1]} : vector<8x96xbf16> to vector<8x8xbf16>
    %cst_33 = arith.constant dense<0.000000e+00> : vector<8x8xf32>
    %95 = tpu.matmul %92, %93, %cst_33 {dimension_numbers = #tpu.dot_dimension_numbers<[1], [1], [0], [0], [0, 0, 1, 0], [], []>} : vector<8x8xbf16>, vector<8x8xbf16>, vector<8x8xf32> -> vector<8x8xf32>
    %cst_34 = arith.constant -1.000000e+30 : f32
    %96 = vector.broadcast %cst_34 : f32 to vector<8x8xf32>
    %97 = arith.select %34, %95, %96 : vector<8x8xi1>, vector<8x8xf32>
    %cst_35 = arith.constant dense<0xFF800000> : vector<8xf32>
    %98 = vector.multi_reduction <maximumf>, %97, %cst_35 [1] : vector<8x8xf32> to vector<8xf32>
    %99 = vector.shape_cast %98 : vector<8xf32> to vector<8x1xf32>
    %100 = vector.broadcast %99 : vector<8x1xf32> to vector<8x8xf32>
    %101 = arith.subf %97, %100 : vector<8x8xf32>
    %102 = math.exp %101 : vector<8x8xf32>
    %cst_36 = arith.constant dense<0.000000e+00> : vector<8xf32>
    %103 = vector.multi_reduction <add>, %102, %cst_36 [1] : vector<8x8xf32> to vector<8xf32>
    %104 = vector.shape_cast %103 : vector<8xf32> to vector<8x1xf32>
    %105 = tpu.reciprocal %104 {approx = true} : vector<8x1xf32> -> vector<8x1xf32>
    %106 = vector.broadcast %105 : vector<8x1xf32> to vector<8x8xf32>
    %107 = arith.mulf %102, %106 : vector<8x8xf32>
    %108 = arith.truncf %107 : vector<8x8xf32> to vector<8x8xbf16>
    %cst_37 = arith.constant dense<0.000000e+00> : vector<8x8xf32>
    %109 = tpu.matmul %108, %94, %cst_37 {dimension_numbers = #tpu.dot_dimension_numbers<[1], [0], [0], [1], [0, 0, 1, 1], [], []>} : vector<8x8xbf16>, vector<8x8xbf16>, vector<8x8xf32> -> vector<8x8xf32>
    %c0_38 = arith.constant 0 : index
    %c24 = arith.constant 24 : index
    %110 = vector.load %arg15[%c0_38, %c24] : memref<8x32xf32, #tpu.memory_space<vmem>>, vector<8x8xf32>
    tpu.vector_store %arg15[%c0_38, %c24], %109 {strides = array<i32>} : memref<8x32xf32, #tpu.memory_space<vmem>>, vector<8x8xf32>,
    %c0_39 = arith.constant 0 : index
    %c0_40 = arith.constant 0 : index
    %111 = vector.load %arg15[%c0_39, %c0_40] : memref<8x32xf32, #tpu.memory_space<vmem>>, vector<8x32xf32>
    %112 = arith.truncf %111 : vector<8x32xf32> to vector<8x32xbf16>
    %c0_41 = arith.constant 0 : index
    %c0_42 = arith.constant 0 : index
    %113 = vector.load %arg6[%c0_41, %c0_42] : memref<32x32xbf16, #tpu.memory_space<vmem>>, vector<32x32xbf16>
    %cst_43 = arith.constant dense<0.000000e+00> : vector<8x32xf32>
    %114 = tpu.matmul %112, %113, %cst_43 {dimension_numbers = #tpu.dot_dimension_numbers<[1], [0], [0], [1], [0, 0, 1, 1], [], []>} : vector<8x32xbf16>, vector<32x32xbf16>, vector<8x32xf32> -> vector<8x32xf32>
    %c0_44 = arith.constant 0 : index
    %c0_45 = arith.constant 0 : index
    %115 = vector.load %arg7[%c0_44, %c0_45] : memref<1x32xbf16, #tpu.memory_space<vmem>>, vector<1x32xbf16>
    %116 = arith.extf %115 : vector<1x32xbf16> to vector<1x32xf32>
    %117 = vector.broadcast %116 : vector<1x32xf32> to vector<8x32xf32>
    %118 = arith.addf %114, %117 : vector<8x32xf32>
    %119 = arith.extf %0 : vector<8x32xbf16> to vector<8x32xf32>
    %120 = arith.addf %119, %118 : vector<8x32xf32>
    %c0_46 = arith.constant 0 : index
    %c0_47 = arith.constant 0 : index
    %121 = vector.load %arg8[%c0_46, %c0_47] : memref<1x32xf32, #tpu.memory_space<vmem>>, vector<1x32xf32>
    %c0_48 = arith.constant 0 : index
    %c0_49 = arith.constant 0 : index
    %122 = vector.load %arg9[%c0_48, %c0_49] : memref<1x32xf32, #tpu.memory_space<vmem>>, vector<1x32xf32>
    %cst_50 = arith.constant dense<0.000000e+00> : vector<8xf32>
    %123 = vector.multi_reduction <add>, %120, %cst_50 [1] : vector<8x32xf32> to vector<8xf32>
    %124 = vector.shape_cast %123 : vector<8xf32> to vector<8x1xf32>
    %cst_51 = arith.constant 3.200000e+01 : f32
    %125 = vector.broadcast %cst_51 : f32 to vector<8x1xf32>
    %126 = arith.divf %124, %125 : vector<8x1xf32>
    %127 = vector.broadcast %126 : vector<8x1xf32> to vector<8x32xf32>
    %128 = arith.subf %120, %127 : vector<8x32xf32>
    %129 = arith.mulf %128, %128 : vector<8x32xf32>
    %cst_52 = arith.constant dense<0.000000e+00> : vector<8xf32>
    %130 = vector.multi_reduction <add>, %129, %cst_52 [1] : vector<8x32xf32> to vector<8xf32>
    %131 = vector.shape_cast %130 : vector<8xf32> to vector<8x1xf32>
    %cst_53 = arith.constant 3.200000e+01 : f32
    %132 = vector.broadcast %cst_53 : f32 to vector<8x1xf32>
    %133 = arith.divf %131, %132 : vector<8x1xf32>
    %cst_54 = arith.constant 9.99999974E-6 : f32
    %134 = vector.broadcast %cst_54 : f32 to vector<8x1xf32>
    %135 = arith.addf %133, %134 : vector<8x1xf32>
    %136 = math.rsqrt %135 : vector<8x1xf32>
    %137 = vector.broadcast %136 : vector<8x1xf32> to vector<8x32xf32>
    %138 = arith.mulf %128, %137 : vector<8x32xf32>
    %139 = vector.broadcast %121 : vector<1x32xf32> to vector<8x32xf32>
    %140 = arith.mulf %138, %139 : vector<8x32xf32>
    %141 = vector.broadcast %122 : vector<1x32xf32> to vector<8x32xf32>
    %142 = arith.addf %140, %141 : vector<8x32xf32>
    %143 = arith.truncf %142 : vector<8x32xf32> to vector<8x32xbf16>
    %c0_55 = arith.constant 0 : index
    %c0_56 = arith.constant 0 : index
    %144 = vector.load %arg10[%c0_55, %c0_56] : memref<32x128xbf16, #tpu.memory_space<vmem>>, vector<32x128xbf16>
    %cst_57 = arith.constant dense<0.000000e+00> : vector<8x128xf32>
    %145 = tpu.matmul %143, %144, %cst_57 {dimension_numbers = #tpu.dot_dimension_numbers<[1], [0], [0], [1], [0, 0, 1, 1], [], []>} : vector<8x32xbf16>, vector<32x128xbf16>, vector<8x128xf32> -> vector<8x128xf32>
    %c0_58 = arith.constant 0 : index
    %c0_59 = arith.constant 0 : index
    %146 = vector.load %arg11[%c0_58, %c0_59] : memref<1x128xbf16, #tpu.memory_space<vmem>>, vector<1x128xbf16>
    %147 = arith.extf %146 : vector<1x128xbf16> to vector<1x128xf32>
    %148 = vector.broadcast %147 : vector<1x128xf32> to vector<8x128xf32>
    %149 = arith.addf %145, %148 : vector<8x128xf32>
    %cst_60 = arith.constant 1.702000e+00 : f32
    %150 = vector.broadcast %cst_60 : f32 to vector<8x128xf32>
    %151 = arith.mulf %150, %149 : vector<8x128xf32>
    %152 = arith.negf %151 : vector<8x128xf32>
    %153 = math.exp %152 : vector<8x128xf32>
    %cst_61 = arith.constant 1.000000e+00 : f32
    %154 = vector.broadcast %cst_61 : f32 to vector<8x128xf32>
    %155 = arith.addf %154, %153 : vector<8x128xf32>
    %156 = arith.divf %154, %155 : vector<8x128xf32>
    %157 = arith.mulf %149, %156 : vector<8x128xf32>
    %158 = arith.truncf %157 : vector<8x128xf32> to vector<8x128xbf16>
    %c0_62 = arith.constant 0 : index
    %c0_63 = arith.constant 0 : index
    %159 = vector.load %arg12[%c0_62, %c0_63] : memref<128x32xbf16, #tpu.memory_space<vmem>>, vector<128x32xbf16>
    %cst_64 = arith.constant dense<0.000000e+00> : vector<8x32xf32>
    %160 = tpu.matmul %158, %159, %cst_64 {dimension_numbers = #tpu.dot_dimension_numbers<[1], [0], [0], [1], [0, 0, 1, 1], [], []>} : vector<8x128xbf16>, vector<128x32xbf16>, vector<8x32xf32> -> vector<8x32xf32>
    %c0_65 = arith.constant 0 : index
    %c0_66 = arith.constant 0 : index
    %161 = vector.load %arg13[%c0_65, %c0_66] : memref<1x32xbf16, #tpu.memory_space<vmem>>, vector<1x32xbf16>
    %162 = arith.extf %161 : vector<1x32xbf16> to vector<1x32xf32>
    %163 = vector.broadcast %162 : vector<1x32xf32> to vector<8x32xf32>
    %164 = arith.addf %160, %163 : vector<8x32xf32>
    %165 = arith.addf %120, %164 : vector<8x32xf32>
    %166 = arith.truncf %165 : vector<8x32xf32> to vector<8x32xbf16>
    %c0_67 = arith.constant 0 : index
    %c0_68 = arith.constant 0 : index
    %167 = vector.load %arg14[%c0_67, %c0_68] : memref<8x32xbf16, #tpu.memory_space<vmem>>, vector<8x32xbf16>
    tpu.vector_store %arg14[%c0_67, %c0_68], %166 {strides = array<i32>} : memref<8x32xbf16, #tpu.memory_space<vmem>>, vector<8x32xbf16>,
    return
  }
  func.func @transform_0(%arg0: i32) -> (i32, i32) {
    %c0_i32 = arith.constant 0 : i32
    %c0_i32_0 = arith.constant 0 : i32
    return %arg0, %c0_i32 : i32, i32
  }
  func.func @transform_1(%arg0: i32) -> (i32, i32) {
    %c0_i32 = arith.constant 0 : i32
    %c0_i32_0 = arith.constant 0 : i32
    %c0_i32_1 = arith.constant 0 : i32
    return %c0_i32, %c0_i32_0 : i32, i32
  }
  func.func @transform_2(%arg0: i32) -> (i32, i32) {
    %c0_i32 = arith.constant 0 : i32
    %c0_i32_0 = arith.constant 0 : i32
    %c0_i32_1 = arith.constant 0 : i32
    return %c0_i32, %c0_i32_0 : i32, i32
  }
  func.func @transform_3(%arg0: i32) -> (i32, i32) {
    %c0_i32 = arith.constant 0 : i32
    %c0_i32_0 = arith.constant 0 : i32
    %c0_i32_1 = arith.constant 0 : i32
    return %c0_i32, %c0_i32_0 : i32, i32
  }
  func.func @transform_4(%arg0: i32) -> (i32, i32) {
    %c0_i32 = arith.constant 0 : i32
    %c0_i32_0 = arith.constant 0 : i32
    %c0_i32_1 = arith.constant 0 : i32
    return %c0_i32, %c0_i32_0 : i32, i32
  }
  func.func @transform_5(%arg0: i32) -> (i32, i32) {
    %c0_i32 = arith.constant 0 : i32
    %c0_i32_0 = arith.constant 0 : i32
    %c0_i32_1 = arith.constant 0 : i32
    return %c0_i32, %c0_i32_0 : i32, i32
  }
  func.func @transform_6(%arg0: i32) -> (i32, i32) {
    %c0_i32 = arith.constant 0 : i32
    %c0_i32_0 = arith.constant 0 : i32
    %c0_i32_1 = arith.constant 0 : i32
    return %c0_i32, %c0_i32_0 : i32, i32
  }
  func.func @transform_7(%arg0: i32) -> (i32, i32) {
    %c0_i32 = arith.constant 0 : i32
    %c0_i32_0 = arith.constant 0 : i32
    %c0_i32_1 = arith.constant 0 : i32
    return %c0_i32, %c0_i32_0 : i32, i32
  }
  func.func @transform_8(%arg0: i32) -> (i32, i32) {
    %c0_i32 = arith.constant 0 : i32
    %c0_i32_0 = arith.constant 0 : i32
    %c0_i32_1 = arith.constant 0 : i32
    return %c0_i32, %c0_i32_0 : i32, i32
  }
  func.func @transform_9(%arg0: i32) -> (i32, i32) {
    %c0_i32 = arith.constant 0 : i32
    %c0_i32_0 = arith.constant 0 : i32
    %c0_i32_1 = arith.constant 0 : i32
    return %c0_i32, %c0_i32_0 : i32, i32
  }
  func.func @transform_10(%arg0: i32) -> (i32, i32) {
    %c0_i32 = arith.constant 0 : i32
    %c0_i32_0 = arith.constant 0 : i32
    %c0_i32_1 = arith.constant 0 : i32
    return %c0_i32, %c0_i32_0 : i32, i32
  }
  func.func @transform_11(%arg0: i32) -> (i32, i32) {
    %c0_i32 = arith.constant 0 : i32
    %c0_i32_0 = arith.constant 0 : i32
    %c0_i32_1 = arith.constant 0 : i32
    return %c0_i32, %c0_i32_0 : i32, i32
  }
  func.func @transform_12(%arg0: i32) -> (i32, i32) {
    %c0_i32 = arith.constant 0 : i32
    %c0_i32_0 = arith.constant 0 : i32
    %c0_i32_1 = arith.constant 0 : i32
    return %c0_i32, %c0_i32_0 : i32, i32
  }
  func.func @transform_13(%arg0: i32) -> (i32, i32) {
    %c0_i32 = arith.constant 0 : i32
    %c0_i32_0 = arith.constant 0 : i32
    return %arg0, %c0_i32 : i32, i32
  }
}

</mosaic_0001>

<bundles_post_ra>
// kernel: tpu_custom_call.1
= control target key start
LH: loop header
LB: loop body
LE: loop exit
PB: predicated region body
PF: predicated region fallthrough
CT: control target
= control target key end

     0   :  { %s2061_s0 = inlined_call_operand.vmem [shape: bf16[16,32], index: 0, kind: input, shape index: {}]   ;;  %s2062_s1 = inlined_call_operand.vmem [shape: f32[1,32], index: 1, kind: input, shape index: {}]   ;;  %s2063_s2 = inlined_call_operand.vmem [shape: f32[1,32], index: 2, kind: input, shape index: {}]   ;;  %s2064_s3 = inlined_call_operand.vmem [shape: bf16[32,96], index: 3, kind: input, shape index: {}]   ;;  %s2065_s4 = inlined_call_operand.vmem [shape: bf16[1,96], index: 4, kind: input, shape index: {}]   ;;  %s2066_s5 = inlined_call_operand.vmem [shape: bf16[32,32], index: 5, kind: input, shape index: {}]   ;;  %s2067_s6 = inlined_call_operand.vmem [shape: bf16[1,32], index: 6, kind: input, shape index: {}]   ;;  %s2068_s7 = inlined_call_operand.vmem [shape: f32[1,32], index: 7, kind: input, shape index: {}]   ;;  %s2069_s8 = inlined_call_operand.vmem [shape: f32[1,32], index: 8, kind: input, shape index: {}]   ;;  %s2070_s9 = inlined_call_operand.vmem [shape: bf16[32,128], index: 9, kind: input, shape index: {}]   ;;  %s2071_s10 = inlined_call_operand.vmem [shape: bf16[1,128], index: 10, kind: input, shape index: {}]   ;;  %s2072_s11 = inlined_call_operand.vmem [shape: bf16[128,32], index: 11, kind: input, shape index: {}]   ;;  %s2073_s12 = inlined_call_operand.vmem [shape: bf16[1,32], index: 12, kind: input, shape index: {}]   ;;  %s2074_s13 = inlined_call_operand.hbm [shape: bf16[16,32], index: 13, kind: output, shape index: {}]  }
   0x1   :  { %2075 = sst [smem:[#allocation6_spill]] %s2061_s0 }
   0x2   :  { %2076 = sst [smem:[#allocation7_spill]] %s2062_s1 }
   0x3   :  { %2077 = sst [smem:[#allocation8_spill]] %s2063_s2 }
   0x4   :  { %18 = vsyncpa [#allocation4], 0 }
   0x5   :  { %20 = vsyncpa [#allocation4 + $0x1], 0  ;;  %s1775_s25 = smov 0   ;;  %s1777_s26 = smov 0  }
   0x6   :  { %s1779_s27 = smov 0   ;;  %s1781_s28 = smov 0  }
   0x7 LB: > { %s1796_s29 = sadd.s32 4294967295, %s1686_s28   ;;  %s1365_s30 = sadd.s32 4294967294, %s1686_s28   ;;  %s1686_s28 = sphi %s1781_s28, %s2086_s28   ;;  %s1682_s27 = sphi %s1779_s27, %s2085_s27   ;;  %s1678_s26 = sphi %s1777_s26, %s2084_s26   ;;  %s1674_s25 = sphi %s1775_s25, %s2083_s25  }
   0x8   : > { %s1800_s14 = sadd.s32 1, %s1686_s28   ;;  %s311_s15 = sadd.s32 1, %s1682_s27 }
   0x9   : > { %s308_s16 = ssub.s32 %s1686_s28, %s1800_s14  ;;  %p321_p0 = scmp.ne.s32.totalorder %s1682_s27, %s1678_s26 }
   0xa   : > { %p309_p1 = scmp.eq.s32.totalorder %s308_s16, 0  ;;  %p322_p2 = scmp.eq.s32.totalorder %s1796_s29, 1 }
   0xb   : > { %p327_p3 = scmp.ne.s32.totalorder %s1678_s26, %s1674_s25  ;;  %p328_p4 = scmp.eq.s32.totalorder %s1365_s30, 1 }
   0xc   : > { %s1811_s17 = scalar_select %p309_p1, %s1682_s27, %s311_s15  }
   0xd   : > { %p1813_p5 = por %p322_p2, %p321_p0  ;;  %p1817_p6 = por %p328_p4, %p327_p3 }
   0xe   : > { %p1368_p7 = scmp.ge.s32.totalorder %s1686_s28, 1  ;;  %p389_p8 = scmp.lt.s32.totalorder %s1686_s28, 3 }
  0x10   : > { %p390_p9 = pnand %p1368_p7, %p389_p8 }
  0x11   : > { %p432_p10 = scmp.lt.s32.totalorder (!%p390_p9), %s1796_s29, 1  ;;  %vm441_vm0 = vcmask (!%p390_p9), 261120   ;;  %s2080_s0 = sld [smem:[#allocation6_spill]] (!%p390_p9)  ;;  %v1586_v8 = vld [vmem:[%s2064_s3] sm:$0xff] (!%p390_p9)   ;;  %v1688_v9 = vmov (!%p390_p9), 0.0   ;;  %vm1689_vm1 = vmmov (!%p390_p9), 0   ;;  %v477_v21 = vlaneseq (!%p390_p9) }
  0x12   : > { %393 = sbr.rel (%p390_p9) target bundleno = 2622 (0xa3e), region = 72  ;;  %1439 = vmatprep.subr.bf16.mxu0 (!%p390_p9), %v1688_v9  ;;  %1443 = vmatprep.mubr.msk.bf16.mxu0 (!%p390_p9), %vm1689_vm1, %v1688_v9  ;;  %v1587_v10 = vld [vmem:[%s2064_s3 + $0x8] sm:$0xff] (!%p390_p9)   ;;  %s2081_s1 = sld [smem:[#allocation7_spill]] (!%p390_p9)  ;;  %v475_v23 = vld [vmem:[%s2065_s4] sm:$0x1] (!%p390_p9)  ;;  %vm545_vm2 = vcmask (!%p390_p9), 64512  }
  0x13   : > { %1440 = vmatpush3.bf16.msra.mxu0 (!%p390_p9), %v1586_v8  ;;  %1459 = vmatprep.subr.bf16.mxu1 (!%p390_p9), %v1688_v9  ;;  %s2082_s2 = sld [smem:[#allocation8_spill]] (!%p390_p9)  ;;  %v1857_v22 = vshrl.u32 (!%p390_p9), %v477_v21, 7  ;;  %v476_v24 = vunpack.c.l.bf16 (!%p390_p9), %v475_v23  ;;  %s1690_s16 = smov (!%p390_p9), 120   ;;  %v540_v44 = vand.u32 (!%p390_p9), 127, %v477_v21  ;;  %vm610_vm4 = vcmask (!%p390_p9), 1043456  }
  0x14   : > { %1441 = vmatprep.subr.bf16.mxu0 (!%p390_p9), %v1688_v9  ;;  %1461 = vmatprep.mubr.msk.bf16.mxu1 (!%p390_p9), %vm1689_vm1, %v1688_v9  ;;  %s1693_s22 = smov (!%p390_p9), 80   ;;  %s1694_s23 = smov (!%p390_p9), 112   ;;  %vm770_vm5 = vcmask (!%p390_p9), 130112   ;;  %vm887_vm6 = vcmask (!%p390_p9), 195712   ;;  %vm1004_vm7 = vcmask (!%p390_p9), 261312   ;;  %vm1290_vm8 = vcmask (!%p390_p9), 257024  }
  0x15   : > { %v1863_v25 = vsub.s32 (!%p390_p9), 0, %v1857_v22  ;;  %s1696_s30 = smov (!%p390_p9), 104   ;;  %vm541_vm3 = vcmp.le.s32.totalorder (!%p390_p9), %v540_v44, %v1857_v22  ;;  %s1697_s15 = smov (!%p390_p9), 64  }
  0x17   : > { %1442 = vmatpush3.bf16.msra.mxu0 (!%p390_p9), %v1587_v10  ;;  %v480_v26 = vrot.slane (!%p390_p9), %v476_v24, %v1863_v25 }
  0x18   : > { %1447 = vmatprep.subr.bf16.mxu0 (!%p390_p9), %v1688_v9  ;;  %v1371_v15 = vld [vmem:[%s2081_s1] ss:$0 sm:$0xff] (!%p390_p9) }
  0x19   : > { %s433_s20 = scalar_select %p432_p10, %s1796_s29, 1  ;;  %v1372_v17 = vld [vmem:[%s2082_s2] ss:$0 sm:$0xff] }
  0x1b   : > { %s1370_s21 = sshll.u32 %s433_s20, 2  ;;  %s1691_s20 = smov 96  }
  0x1c   : > { %s435_s24 = scalar_lea.vmem %s2080_s0, %s1370_s21  ;;  %s1692_s21 = smov 88  }
  0x1d   : > { %v437_v0 = vld [vmem:[%s435_s24] sm:$0xf]  ;;  %s1695_s24 = smov 72  }
  0x1e   : > { %v1828_v1 = vunpack.c.l.bf16 %v437_v0 }
  0x20   : > { %v442_v2 = vsel %vm441_vm0, %v1828_v1, 0.0 }
  0x21   : > { %443 = vadd.xlane.f32.xlu0 %v442_v2 }
  0xae   : > { %v444_v3 = vpop.xlane.xlu0 %443 }
  0xaf   : > { %v446_v4 = vmul.f32 0.03125, %v444_v3 }
  0xb1   : > { %v447_v5 = vsub.f32 %v1828_v1, %v446_v4 }
  0xb3   : > { %v448_v6 = vmul.f32 %v447_v5, %v447_v5 }
  0xb5   : > { %v449_v7 = vsel %vm441_vm0, %v448_v6, 0.0 }
  0xb6   : > { %450 = vadd.xlane.f32.xlu0 %v449_v7 }
 0x143   : > { %v451_v11 = vpop.xlane.xlu0 %450 }
 0x144   : > { %v452_v12 = vmul.f32 0.03125, %v451_v11 }
 0x146   : > { %v453_v13 = vadd.f32 1e-05, %v452_v12 }
 0x148   : > { %1600 = vrsqrt.f32 %v453_v13 }
 0x152   : > { %v1601_v14 = vpop.eup %1600 }
 0x153   : > { %v455_v16 = vmul.f32 %v1601_v14, %v447_v5 }
 0x155   : > { %v462_v18 = vmul.f32 %v1371_v15, %v455_v16 }
 0x157   : > { %v469_v19 = vadd.f32 %v1372_v17, %v462_v18 }
 0x159   : > { %v470_v20 = vpack.c.bf16 %v469_v19, %v469_v19 }
 0x15b   : > { %1444 = vmatmul.mubr.msk.bf16.vlgmr.msra.gmra.mrb[0].mxu0 %vm441_vm0, %v470_v20 }
 0x15c   : > { %1449 = vmatprep.mubr.msk.bf16.mxu0 %vm1689_vm1, %v1688_v9 }
 0x22e   : > { %v530_v27 = vpop.f32.mrb[0].mxu0 }
 0x22f   : > { %v531_v28 = vadd.f32 %v530_v27, %v480_v26  ;;  %v1445_v29 = vpop.f32.mrb[1].mxu0 }
 0x230   : > { %v533_v30 = vpop.f32.mrb[2].mxu0 }
 0x231   : > { %v1866_v31 = vpack.c.bf16 %v531_v28, %v531_v28  ;;  %v1446_v32 = vpop.f32.mrb[3].mxu0 }
 0x233   : > { %655 = vrot.lane.b32.xlu0 %v1866_v31, %s1690_s16  ;;  %543 = vrot.lane.b32.xlu1 %v1866_v31, %s1691_s20  ;;  %s1698_s16 = smov 56   ;;  %s1699_s20 = smov 48  }
 0x237   : > { %657 = vrot.lane.b32.xlu1 %v1866_v31, %s1692_s21  ;;  %s1700_s21 = smov 40  }
 0x23b   : > { %774 = vrot.lane.b32.xlu1 %v1866_v31, %s1693_s22  ;;  %s1701_s22 = smov 8  }
 0x23f   : > { %772 = vrot.lane.b32.xlu1 %v1866_v31, %s1694_s23 }
 0x243   : > { %891 = vrot.lane.b32.xlu1 %v1866_v31, %s1695_s24 }
 0x247   : > { %889 = vrot.lane.b32.xlu1 %v1866_v31, %s1696_s30 }
 0x2a5   : > { %v544_v33 = vpop.permute.xlu1 %543  ;;  %v656_v38 = vpop.permute.xlu0 %655 }
 0x2a6   : > { %v550_v34 = vsel %vm545_vm2, %v544_v33, 0 }
 0x2a7   : > { %1448 = vmatpush3.bf16.xpose.msra.mxu0 %v550_v34 }
 0x2a8   : > { %1453 = vmatprep.subr.bf16.mxu0 %v1688_v9 }
 0x2a9   : > { %v658_v35 = vpop.permute.xlu1 %657 }
 0x2aa   : > { %v663_v36 = vsel %vm545_vm2, %v658_v35, 0 }
 0x2ab   : > { %1460 = vmatpush3.bf16.xpose.msra.mxu1 %v663_v36 }
 0x2ac   : > { %1471 = vmatprep.subr.bf16.mxu1 %v1688_v9 }
 0x2ad   : > { %v775_v37 = vpop.permute.xlu1 %774 }
 0x2ae   : > { %1450 = vmatmul.mubr.msk.bf16.vlgmr.msra.gmra.mrb[4].mxu0 %vm545_vm2, %v1866_v31  ;;  %v780_v40 = vsel %vm545_vm2, %v775_v37, 0 }
 0x2af   : > { %1455 = vmatprep.mubr.msk.bf16.mxu0 %vm1689_vm1, %v1688_v9 }
 0x2b1   : > { %v773_v39 = vpop.permute.xlu1 %772 }
 0x2b2   : > { %1462 = vmatmul.mubr.msk.bf16.vlgmr.msra.gmra.mrb[0].mxu1 %vm545_vm2, %v656_v38 }
 0x2b3   : > { %1472 = vmatpush3.bf16.xpose.msra.mxu1 %v780_v40  ;;  %1473 = vmatprep.mubr.msk.bf16.mxu1 %vm1689_vm1, %v1688_v9 }
 0x2b4   : > { %1483 = vmatprep.subr.bf16.mxu1 %v1688_v9 }
 0x2b5   : > { %v892_v41 = vpop.permute.xlu1 %891 }
 0x2b6   : > { %v897_v42 = vsel %vm545_vm2, %v892_v41, 0 }
 0x2b9   : > { %v890_v43 = vpop.permute.xlu1 %889 }
 0x2ba   : > { %1474 = vmatmul.mubr.msk.bf16.vlgmr.msra.gmra.mrb[4].mxu1 %vm545_vm2, %v773_v39 }
 0x2bb   : > { %1484 = vmatpush3.bf16.xpose.msra.mxu1 %v897_v42  ;;  %1485 = vmatprep.mubr.msk.bf16.mxu1 %vm1689_vm1, %v1688_v9 }
 0x2bc   : > { %1495 = vmatprep.subr.bf16.mxu1 %v1688_v9 }
 0x2c2   : > { %1486 = vmatmul.mubr.msk.bf16.vlgmr.msra.gmra.mrb[8].mxu1 %vm545_vm2, %v890_v43 }
 0x2c3   : > { %1499 = vmatprep.mubr.msk.bf16.mxu1 %vm1689_vm1, %v1688_v9 }
 0x381   : > { %v586_v45 = vpop.f32.mrb[4].mxu0 }
 0x382   : > { %v592_v46 = vsel %vm541_vm3, %v586_v45, -1e+30  ;;  %v1451_v47 = vpop.f32.mrb[5].mxu0 }
 0x383   : > { %v589_v48 = vpop.f32.mrb[6].mxu0  ;;  %v593_v49 = vsel %vm545_vm2, %v592_v46, -inf }
 0x384   : > { %594 = vmax.xlane.f32.xlu1 %v593_v49  ;;  %v1452_v50 = vpop.f32.mrb[7].mxu0 }
 0x385   : > { %v699_v51 = vpop.f32.mrb[0].mxu1 }
 0x386   : > { %v705_v52 = vsel %vm541_vm3, %v699_v51, -1e+30  ;;  %v1463_v53 = vpop.f32.mrb[1].mxu1 }
 0x387   : > { %v702_v54 = vpop.f32.mrb[2].mxu1  ;;  %v706_v55 = vsel %vm545_vm2, %v705_v52, -inf }
 0x388   : > { %707 = vmax.xlane.f32.xlu0 %v706_v55  ;;  %v1464_v56 = vpop.f32.mrb[3].mxu1 }
 0x38d   : > { %v816_v57 = vpop.f32.mrb[4].mxu1 }
 0x38e   : > { %v822_v58 = vsel %vm541_vm3, %v816_v57, -1e+30  ;;  %v1475_v59 = vpop.f32.mrb[5].mxu1 }
 0x38f   : > { %v819_v60 = vpop.f32.mrb[6].mxu1  ;;  %v823_v61 = vsel %vm545_vm2, %v822_v58, -inf }
 0x390   : > { %v1476_v62 = vpop.f32.mrb[7].mxu1  ;;  %824 = vmax.xlane.f32.xlu1 %v823_v61  ;;  %v1588_v60 = vld [vmem:[%s2066_s5] sm:$0xff]   ;;  %v1589_v61 = vld [vmem:[%s2066_s5 + $0x8] sm:$0xff]  }
 0x391   : > { %1496 = vmatpush3.bf16.msra.mxu1 %v1588_v60 }
 0x392   : > { %1497 = vmatprep.subr.bf16.mxu1 %v1688_v9 }
 0x395   : > { %v933_v63 = vpop.f32.mrb[8].mxu1  ;;  %1498 = vmatpush3.bf16.msra.mxu1 %v1589_v61 }
 0x396   : > { %v939_v0 = vsel %vm541_vm3, %v933_v63, -1e+30  ;;  %v1487_v2 = vpop.f32.mrb[9].mxu1  ;;  %1511 = vmatprep.subr.bf16.mxu1 %v1688_v9 }
 0x397   : > { %v936_v3 = vpop.f32.mrb[10].mxu1  ;;  %v940_v4 = vsel %vm545_vm2, %v939_v0, -inf }
 0x398   : > { %941 = vmax.xlane.f32.xlu0 %v940_v4  ;;  %v1488_v5 = vpop.f32.mrb[11].mxu1 }
 0x411   : > { %v595_v6 = vpop.xlane.xlu1 %594 }
 0x412   : > { %v596_v7 = vsub.f32 %v592_v46, %v595_v6 }
 0x414   : > { %v597_v8 = vmul.f32 1.442695, %v596_v7 }
 0x415   : > { %v708_v10 = vpop.xlane.xlu0 %707 }
 0x416   : > { %1602 = vpow2.f32 %v597_v8  ;;  %v709_v11 = vsub.f32 %v705_v52, %v708_v10 }
 0x418   : > { %v710_v12 = vmul.f32 1.442695, %v709_v11 }
 0x41a   : > { %1604 = vpow2.f32 %v710_v12 }
 0x41d   : > { %v825_v22 = vpop.xlane.xlu1 %824 }
 0x41e   : > { %v826_v23 = vsub.f32 %v822_v58, %v825_v22 }
 0x420   : > { %v1603_v13 = vpop.eup %1602  ;;  %v827_v24 = vmul.f32 1.442695, %v826_v23 }
 0x421   : > { %v599_v14 = vsel %vm545_vm2, %v1603_v13, 0.0 }
 0x422   : > { %600 = vadd.xlane.f32.xlu1 %v599_v14 }
 0x424   : > { %v1605_v15 = vpop.eup %1604 }
 0x425   : > { %v942_v16 = vpop.xlane.xlu0 %941  ;;  %v712_v17 = vsel %vm545_vm2, %v1605_v15, 0.0 }
 0x426   : > { %v943_v18 = vsub.f32 %v939_v0, %v942_v16  ;;  %713 = vadd.xlane.f32.xlu0 %v712_v17 }
 0x428   : > { %v944_v19 = vmul.f32 1.442695, %v943_v18 }
 0x42a   : > { %1606 = vpow2.f32 %v944_v19 }
 0x42b   : > { %1608 = vpow2.f32 %v827_v24 }
 0x433   : > { %605 = vrot.lane.b32.xlu1 %v1866_v31, %s1697_s15 }
 0x434   : > { %v1607_v20 = vpop.eup %1606 }
 0x435   : > { %v946_v21 = vsel %vm545_vm2, %v1607_v20, 0.0  ;;  %v1609_v26 = vpop.eup %1608 }
 0x436   : > { %947 = vadd.xlane.f32.xlu0 %v946_v21  ;;  %v829_v27 = vsel %vm545_vm2, %v1609_v26, 0.0 }
 0x44c   : > { %718 = vrot.lane.b32.xlu0 %v1866_v31, %s1698_s16  ;;  %s1702_s16 = smov 16  }
 0x457   : > { %830 = vadd.xlane.f32.xlu1 %v829_v27 }
 0x468   : > { %835 = vrot.lane.b32.xlu1 %v1866_v31, %s1699_s20  ;;  %s1703_s20 = smov 24  }
 0x46c   : > { %952 = vrot.lane.b32.xlu1 %v1866_v31, %s1700_s21  ;;  %s1402_s21 = sshll.u32 %s1796_s29, 6 }
 0x46d   : > { %s2019_s15 = scalar_lea.hbm %s2074_s13, %s1402_s21 }
 0x4af   : > { %v601_v28 = vpop.xlane.xlu1 %600 }
 0x4b0   : > { %1610 = vrcp.f32 %v601_v28 }
 0x4b3   : > { %v606_v29 = vpop.permute.xlu1 %605  ;;  %v714_v32 = vpop.xlane.xlu0 %713 }
 0x4b4   : > { %v612_v30 = vsel %vm610_vm4, %v606_v29, 0  ;;  %1612 = vrcp.f32 %v714_v32  ;;  %v1590_v29 = vld [vmem:[%s2070_s9] sm:$0xff]  }
 0x4b5   : > { %1454 = vmatpush3.bf16.msra.mxu0 %v612_v30 }
 0x4b6   : > { %1465 = vmatprep.subr.bf16.mxu0 %v1688_v9 }
 0x4ba   : > { %v1611_v33 = vpop.eup %1610 }
 0x4bb   : > { %v603_v34 = vmul.f32 %v1611_v33, %v1603_v13  ;;  %v1012_v13 = vld [vmem:[%s2067_s6] sm:$0x1] }
 0x4bc   : > { %v1013_v14 = vunpack.c.l.bf16 %v1012_v13 }
 0x4bd   : > { %v604_v35 = vpack.c.bf16 %v603_v34, %v603_v34 }
 0x4be   : > { %v1613_v31 = vpop.eup %1612 }
 0x4bf   : > { %1456 = vmatmul.mubr.msk.bf16.vlgmr.msra.gmra.mrb[8].mxu0 %vm545_vm2, %v604_v35  ;;  %v716_v37 = vmul.f32 %v1613_v31, %v1605_v15  ;;  %v1017_v15 = vrot.slane %v1013_v14, %v1863_v25  ;;  %v1387_v35 = vld [vmem:[%s2068_s7] ss:$0 sm:$0xff] }
 0x4c0   : > { %1467 = vmatprep.mubr.msk.bf16.mxu0 %vm1689_vm1, %v1688_v9 }
 0x4c1   : > { %v717_v40 = vpack.c.bf16 %v716_v37, %v716_v37 }
 0x4c3   : > { %v948_v36 = vpop.xlane.xlu0 %947 }
 0x4c7   : > { %v719_v38 = vpop.permute.xlu0 %718 }
 0x4c8   : > { %v724_v39 = vsel %vm610_vm4, %v719_v38, 0 }
 0x4c9   : > { %1466 = vmatpush3.bf16.msra.mxu0 %v724_v39 }
 0x4ca   : > { %1477 = vmatprep.subr.bf16.mxu0 %v1688_v9 }
 0x4cc   : > { %1468 = vmatmul.mubr.msk.bf16.vlgmr.msra.gmra.mrb[12].mxu0 %vm545_vm2, %v717_v40  ;;  %v1592_v40 = vld [vmem:[%s2072_s11] sm:$0xff]  }
 0x4cd   : > { %1479 = vmatprep.mubr.msk.bf16.mxu0 %vm1689_vm1, %v1688_v9 }
 0x4e4   : > { %v831_v41 = vpop.xlane.xlu1 %830 }
 0x4e5   : > { %1614 = vrcp.f32 %v831_v41  ;;  %v1593_v41 = vld [vmem:[%s2072_s11 + $0x8] sm:$0xff]  }
 0x4e6   : > { %1616 = vrcp.f32 %v948_v36  ;;  %v1388_v36 = vld [vmem:[%s2069_s8] ss:$0 sm:$0xff] }
 0x4e8   : > { %v836_v42 = vpop.permute.xlu1 %835 }
 0x4e9   : > { %v841_v43 = vsel %vm610_vm4, %v836_v42, 0  ;;  %v1594_v42 = vld [vmem:[%s2072_s11 + $0x10] sm:$0xff]  }
 0x4ea   : > { %1478 = vmatpush3.bf16.msra.mxu0 %v841_v43  ;;  %v1595_v43 = vld [vmem:[%s2072_s11 + $0x18] sm:$0xff]  }
 0x4eb   : > { %1489 = vmatprep.subr.bf16.mxu0 %v1688_v9 }
 0x4ec   : > { %v953_v46 = vpop.permute.xlu1 %952 }
 0x4ed   : > { %v958_v49 = vsel %vm610_vm4, %v953_v46, 0  ;;  %v1598_v46 = vld [vmem:[%s2072_s11 + $0x30] sm:$0xff]  }
 0x4ef   : > { %v1615_v44 = vpop.eup %1614 }
 0x4f0   : > { %v833_v45 = vmul.f32 %v1615_v44, %v1609_v26  ;;  %v1617_v48 = vpop.eup %1616  ;;  %v1596_v44 = vld [vmem:[%s2072_s11 + $0x20] sm:$0xff]  }
 0x4f1   : > { %v950_v50 = vmul.f32 %v1617_v48, %v1607_v20  ;;  %v1108_v48 = vld [vmem:[%s2071_s10] sm:$0x1] }
 0x4f2   : > { %v834_v47 = vpack.c.bf16 %v833_v45, %v833_v45  ;;  %v1597_v45 = vld [vmem:[%s2072_s11 + $0x28] sm:$0xff]  }
 0x4f3   : > { %v951_v51 = vpack.c.bf16 %v950_v50, %v950_v50 }
 0x4f4   : > { %1480 = vmatmul.mubr.msk.bf16.vlgmr.msra.gmra.mrb[16].mxu0 %vm545_vm2, %v834_v47  ;;  %v1599_v47 = vld [vmem:[%s2072_s11 + $0x38] sm:$0xff]  }
 0x4f5   : > { %1490 = vmatpush3.bf16.msra.mxu0 %v958_v49  ;;  %1491 = vmatprep.mubr.msk.bf16.mxu0 %vm1689_vm1, %v1688_v9  ;;  %v1109_v49 = vunpack.c.l.bf16 %v1108_v48 }
 0x4f6   : > { %1503 = vmatprep.subr.bf16.mxu0 %v1688_v9 }
 0x4f7   : > { %v1113_v50 = vrot.slane %v1109_v49, %v1863_v25 }
 0x4fc   : > { %1492 = vmatmul.mubr.msk.bf16.vlgmr.msra.gmra.mrb[20].mxu0 %vm545_vm2, %v951_v51 }
 0x4fd   : > { %1507 = vmatprep.mubr.msk.bf16.mxu0 %vm1689_vm1, %v1688_v9  ;;  %1504 = vmatpush3.bf16.msra.mxu0 %v1590_v29 }
 0x4fe   : > { %1505 = vmatprep.subr.bf16.mxu0 %v1688_v9 }
 0x592   : > { %v648_v52 = vpop.f32.mrb[8].mxu0 }
 0x593   : > { %654 = vst.msk [vmem:[#allocation2] sm:$0xff] %vm545_vm2, %v648_v52  ;;  %v1457_v53 = vpop.f32.mrb[9].mxu0 }
 0x594   : > { %v651_v54 = vpop.f32.mrb[10].mxu0 }
 0x595   : > { %v1458_v55 = vpop.f32.mrb[11].mxu0 }
 0x59f   : > { %v760_v56 = vpop.f32.mrb[12].mxu0 }
 0x5a0   : > { %767 = vrot.lane.b32.xlu0 %v760_v56, %s1701_s22  ;;  %v1469_v57 = vpop.f32.mrb[13].mxu0 }
 0x5a1   : > { %v763_v58 = vpop.f32.mrb[14].mxu0 }
 0x5a2   : > { %v1470_v59 = vpop.f32.mrb[15].mxu0 }
 0x5c7   : > { %v877_v62 = vpop.f32.mrb[16].mxu0 }
 0x5c8   : > { %884 = vrot.lane.b32.xlu1 %v877_v62, %s1702_s16  ;;  %v1481_v63 = vpop.f32.mrb[17].mxu0  ;;  %v1194_v62 = vld [vmem:[%s2073_s12] sm:$0x1]  ;;  %s429_s16 = sand.u32 1, %s1678_s26  }
 0x5c9   : > { %v880_v0 = vpop.f32.mrb[18].mxu0  ;;  %v1195_v63 = vunpack.c.l.bf16 %v1194_v62  ;;  %s1293_s0 = scalar_lea.sflag [#allocation4], %s429_s16 }
 0x5ca   : > { %v1482_v2 = vpop.f32.mrb[19].mxu0 }
 0x5cb   : > { %v1199_v0 = vrot.slane %v1195_v63, %v1863_v25 }
 0x5cf   : > { %v994_v3 = vpop.f32.mrb[20].mxu0 }
 0x5d0   : > { %1001 = vrot.lane.b32.xlu0 %v994_v3, %s1703_s20  ;;  %v1493_v4 = vpop.f32.mrb[21].mxu0  ;;  %s1369_s20 = sshll.u32 %s429_s16, 2 }
 0x5d1   : > { %v997_v5 = vpop.f32.mrb[22].mxu0  ;;  %s431_s22 = scalar_lea.vmem [#allocation3], %s1369_s20  ;;  %s1704_s20 = smov [#allocation3]  }
 0x5d2   : > { %v1494_v6 = vpop.f32.mrb[23].mxu0  ;;  %s1306_s23 = sshll.u32 %s431_s22, 4  ;;  %s1628_s1 = sshll.u32 %s1704_s20, 4  ;;  %s2021_s23 = int_to_ptr.vmem [resolvable:$true] %s1306_s23  ;;  %s1629_s1 = int_to_ptr.vmem [resolvable:$false] %s1628_s1 }
 0x5d3   : > { %s1624_s29 = scalar_lea.vmem %s2021_s23, 64  ;;  %s1630_s2 = scalar_lea.vmem %s1629_s1, 128 }
 0x5d4   : > { %p1625_p11 = scmp.ne.s32.totalorder %s2021_s23, %s1624_s29  ;;  %p1631_p0 = scmp.lt.s32.totalorder %s2021_s23, %s1629_s1 }
 0x5d5   : > { %p1632_p1 = scmp.lt.s32.totalorder %s1630_s2, %s1624_s29 }
 0x5d6   : > { %p1626_p12 = pnand %p1625_p11, %p1813_p5 }
 0x5d7   : > { %p1633_p2 = por %p1632_p1, %p1631_p0 }
 0x5d8   : > { %p1627_p13 = pneg %p1626_p12 }
 0x5da   : > { %p1634_p3 = pnand %p1633_p2, %p1627_p13 }
 0x612   : > { %v768_v7 = vpop.permute.xlu0 %767 }
 0x613   : > { %771 = vst.msk [vmem:[#allocation2] sm:$0xff] %vm770_vm5, %v768_v7 }
 0x63a   : > { %v885_v8 = vpop.permute.xlu1 %884 }
 0x63b   : > { %888 = vst.msk [vmem:[#allocation2] sm:$0xff] %vm887_vm6, %v885_v8 }
 0x642   : > { %v1002_v10 = vpop.permute.xlu0 %1001 }
 0x643   : > { %1005 = vst.msk [vmem:[#allocation2] sm:$0xff] %vm1004_vm7, %v1002_v10 }
 0x64a   : > { %v1006_v11 = vld [vmem:[#allocation2] sm:$0xff] }
 0x64b   : > { %v1007_v12 = vpack.c.bf16 %v1006_v11, %v1006_v11 }
 0x64d   : > { %1500 = vmatmul.mubr.msk.bf16.vlgmr.msra.gmra.mrb[12].mxu1 %vm441_vm0, %v1007_v12 }
 0x64e   : > { %1527 = vmatprep.mubr.msk.bf16.mxu1 %vm1689_vm1, %v1688_v9  ;;  %1512 = vmatpush3.bf16.msra.mxu1 %v1592_v40 }
 0x64f   : > { %1513 = vmatprep.subr.bf16.mxu1 %v1688_v9 }
 0x652   : > { %1514 = vmatpush3.bf16.msra.mxu1 %v1593_v41 }
 0x653   : > { %1515 = vmatprep.subr.bf16.mxu1 %v1688_v9 }
 0x656   : > { %1516 = vmatpush3.bf16.msra.mxu1 %v1594_v42 }
 0x657   : > { %1517 = vmatprep.subr.bf16.mxu1 %v1688_v9 }
 0x65a   : > { %1518 = vmatpush3.bf16.msra.mxu1 %v1595_v43 }
 0x65b   : > { %1519 = vmatprep.subr.bf16.mxu1 %v1688_v9 }
 0x65e   : > { %1520 = vmatpush3.bf16.msra.mxu1 %v1596_v44 }
 0x65f   : > { %1521 = vmatprep.subr.bf16.mxu1 %v1688_v9 }
 0x662   : > { %1522 = vmatpush3.bf16.msra.mxu1 %v1597_v45 }
 0x663   : > { %1523 = vmatprep.subr.bf16.mxu1 %v1688_v9 }
 0x666   : > { %1524 = vmatpush3.bf16.msra.mxu1 %v1598_v46 }
 0x667   : > { %1525 = vmatprep.subr.bf16.mxu1 %v1688_v9 }
 0x66a   : > { %1526 = vmatpush3.bf16.msra.mxu1 %v1599_v47 }
 0x720   : > { %v1067_v16 = vpop.f32.mrb[12].mxu1 }
 0x721   : > { %v1068_v17 = vadd.f32 %v1067_v16, %v1017_v15  ;;  %v1501_v18 = vpop.f32.mrb[13].mxu1 }
 0x722   : > { %v1070_v19 = vpop.f32.mrb[14].mxu1 }
 0x723   : > { %v1954_v20 = vadd.f32 %v1068_v17, %v1828_v1  ;;  %v1502_v21 = vpop.f32.mrb[15].mxu1  ;;  %v1591_v1 = vld [vmem:[%s2070_s9 + $0x8] sm:$0xff]  }
 0x724   : > { %1506 = vmatpush3.bf16.msra.mxu0 %v1591_v1 }
 0x725   : > { %v1076_v22 = vsel %vm441_vm0, %v1954_v20, 0.0 }
 0x726   : > { %1077 = vadd.xlane.f32.xlu1 %v1076_v22 }
 0x7b3   : > { %v1078_v23 = vpop.xlane.xlu1 %1077 }
 0x7b4   : > { %v1079_v24 = vmul.f32 0.03125, %v1078_v23 }
 0x7b6   : > { %v1080_v26 = vsub.f32 %v1954_v20, %v1079_v24 }
 0x7b8   : > { %v1081_v27 = vmul.f32 %v1080_v26, %v1080_v26 }
 0x7ba   : > { %v1082_v28 = vsel %vm441_vm0, %v1081_v27, 0.0 }
 0x7bb   : > { %1083 = vadd.xlane.f32.xlu0 %v1082_v28 }
 0x848   : > { %v1084_v30 = vpop.xlane.xlu0 %1083 }
 0x849   : > { %v1085_v32 = vmul.f32 0.03125, %v1084_v30 }
 0x84b   : > { %v1086_v33 = vadd.f32 1e-05, %v1085_v32 }
 0x84d   : > { %1618 = vrsqrt.f32 %v1086_v33 }
 0x857   : > { %v1619_v34 = vpop.eup %1618 }
 0x858   : > { %v1088_v31 = vmul.f32 %v1619_v34, %v1080_v26 }
 0x85a   : > { %v1095_v37 = vmul.f32 %v1387_v35, %v1088_v31 }
 0x85c   : > { %v1102_v38 = vadd.f32 %v1388_v36, %v1095_v37 }
 0x85e   : > { %v1103_v39 = vpack.c.bf16 %v1102_v38, %v1102_v38 }
 0x860   : > { %1508 = vmatmul.mubr.msk.bf16.vlgmr.msra.gmra.mrb[24].mxu0 %vm441_vm0, %v1103_v39 }
 0x933   : > { %v1163_v51 = vpop.f32.mrb[24].mxu0 }
 0x934   : > { %v1164_v52 = vadd.f32 %v1163_v51, %v1113_v50  ;;  %v1509_v53 = vpop.f32.mrb[25].mxu0 }
 0x935   : > { %v1166_v54 = vpop.f32.mrb[26].mxu0 }
 0x936   : > { %v1392_v55 = vmul.f32 -1.702, %v1164_v52  ;;  %v1510_v56 = vpop.f32.mrb[27].mxu0 }
 0x938   : > { %v1171_v9 = vmul.f32 1.442695, %v1392_v55 }
 0x93a   : > { %1620 = vpow2.f32 %v1171_v9 }
 0x944   : > { %v1621_v57 = vpop.eup %1620 }
 0x945   : > { %v1173_v58 = vadd.f32 1.0, %v1621_v57 }
 0x947   : > { %1622 = vrcp.f32 %v1173_v58 }
 0x951   : > { %v1623_v59 = vpop.eup %1622 }
 0x952   : > { %v1176_v60 = vmul.f32 %v1623_v59, %v1164_v52 }
 0x954   : > { %v1177_v61 = vpack.c.bf16 %v1176_v60, %v1176_v60 }
 0x956   : > { %1528 = vmatmul.mubr.bf16.vlgmr.msra.gmra.mrb[16].mxu1 %v1177_v61 }
 0xa29   : > { %v1282_v2 = vpop.f32.mrb[16].mxu1 }
 0xa2a   : > { %v1283_v3 = vadd.f32 %v1282_v2, %v1199_v0  ;;  %v1529_v4 = vpop.f32.mrb[17].mxu1 }
 0xa2b   : > { %v1285_v5 = vpop.f32.mrb[18].mxu1 }
 0xa2c   : > { %v1288_v6 = vadd.f32 %v1283_v3, %v1954_v20  ;;  %v1530_v7 = vpop.f32.mrb[19].mxu1 }
 0xa2e   : > { %v1289_v8 = vpack.c.bf16 %v1288_v6, %v1288_v6 }
 0xa30   : > { %1291 = vst.msk [vmem:[%s431_s22] sm:$0xf] %vm1290_vm8, %v1289_v8 }
 0xa31   : > { %1637 = shalt.err (!%p1634_p3)
}
 0xa32   : > { %s1638_s16 = scalar_lea.hbm %s2019_s15, 64  ;;  %s1642_s24 = scalar_lea.hbm %s2074_s13, 128 }
 0xa33   : > { %p1639_p4 = scmp.ne.s32.totalorder %s2019_s15, %s1638_s16  ;;  %p1643_p9 = scmp.lt.u32.totalorder %s2019_s15, %s2074_s13 }
 0xa34   : > { %p1644_p10 = scmp.lt.u32.totalorder %s1642_s24, %s1638_s16  ;;  %p1646_p12 = scmp.lt.u32.totalorder %s1638_s16, %s2019_s15 }
 0xa35   : > { %p1640_p7 = pnand %p1639_p4, %p1813_p5 }
 0xa36   : > { %p1645_p11 = por %p1644_p10, %p1643_p9 }
 0xa37   : > { %p1641_p8 = pneg %p1640_p7 }
 0xa38   : > { %p1647_p13 = por %p1646_p12, %p1645_p11 }
 0xa3a   : > { %p1648_p0 = pnand %p1647_p13, %p1641_p8 }
 0xa3c   : > { %1651 = shalt.err (!%p1648_p0)
}
 0xa3d   : > { %1531 = dma.vmem_to_hbm [thread:$0]  (%p1813_p5), %s2021_s23, 64, %s2019_s15, %s1293_s0  }
 0xa3e PF: > { %p1537_p1 = scmp.ge.s32.totalorder %s1686_s28, 2  ;;  %s1318_s2 = sand.u32 1, %s1674_s25  }
 0xa3f   : > { %s1319_s29 = scalar_lea.sflag [#allocation4], %s1318_s2 }
 0xa40   : > { %p1534_p2 = pnand %p1537_p1, %p1817_p6 }
 0xa42   : > { %1669 = dma.done.wait (!%p1534_p2), %s1319_s29, 64  }
 0xa43   : > { %1671 = vsyncadd (!%p1534_p2), %s1319_s29, 4294967232  ;;  %p23_p3 = scmp.ge.s32.totalorder %s1800_s14, 4   ;;  %s2083_s25 = smov %s1678_s26 }
 0xa44   : > { %s2084_s26 = smov %s1682_s27  ;;  %s2085_s27 = smov %s1811_s17 }
 0xa45   : > { %s2086_s28 = smov %s1800_s14  ;;  %25 = sbr.rel (!%p23_p3) target bundleno = 7 (0x7), region = 107 }
 0xa4c   :  { %1324 = vsyncpa [#allocation4], 1 }
 0xa4d   :  { %1326 = vsyncpa [#allocation4 + $0x1], 1 }

</bundles_post_ra>
